<compile_context>
chip_gen: v6e
topology: v6e:2x2x1
jax: 0.10.0
libtpu: 0.0.40
codegen_flags: <defaults>
</compile_context>

<pallas_src>
import functools

import jax
import jax.numpy as jnp
from jax.experimental import pallas as pl
from jax.experimental.pallas import tpu as pltpu


def _gdice_kernel(logits_ref, targets_ref,
                  out_t_ref, out_l_ref, out_tl_ref,
                  sum_t, sum_l, sum_tl,
                  *, V, tile, num_vt_half):
    p = pl.program_id(0)          # parallel shard (TensorCore split on v7x)
    n = pl.program_id(1)          # batch sample
    j = pl.program_id(2)          # voxel tile within this shard
    n_last = pl.num_programs(1) - 1

    first = jnp.logical_and(n == 0, j == 0)
    last = jnp.logical_and(n == n_last, j == num_vt_half - 1)

    @pl.when(first)
    def _():
        sum_t[...] = jnp.zeros_like(sum_t)
        sum_l[...] = jnp.zeros_like(sum_l)
        sum_tl[...] = jnp.zeros_like(sum_tl)
        out_t_ref[...] = jnp.zeros_like(out_t_ref)
        out_l_ref[...] = jnp.zeros_like(out_l_ref)
        out_tl_ref[...] = jnp.zeros_like(out_tl_ref)

    # Logical start of this tile along the flattened voxel axis.  The
    # index_map clamps the block index into range, so a fully out-of-range
    # tile re-reads the last block but is masked to zero here.
    v_start = (p * num_vt_half + j) * tile

    def accum(t, l):
        sum_t[...] += jnp.sum(t, axis=1, keepdims=True)
        sum_l[...] += jnp.sum(l, axis=1, keepdims=True)
        sum_tl[...] += jnp.sum(t * l, axis=1, keepdims=True)

    ragged = v_start + tile > V

    @pl.when(jnp.logical_not(ragged))
    def _():
        accum(targets_ref[0], logits_ref[0])

    @pl.when(ragged)
    def _():
        shape = targets_ref.shape[1:]                    # (C, tile)
        lane = jax.lax.broadcasted_iota(jnp.int32, shape, 1)
        valid = (v_start + lane) < V
        accum(jnp.where(valid, targets_ref[0], 0.0),
              jnp.where(valid, logits_ref[0], 0.0))

    @pl.when(last)
    def _():
        out_t_ref[0] = sum_t[...]
        out_l_ref[0] = sum_l[...]
        out_tl_ref[0] = sum_tl[...]


def generalized_dice(logits, targets, *, tile=65536):
    """logits, targets: (N, C, D, H, W) float32. Returns scalar float32."""
    N, C, D, H, W = logits.shape
    V = D * H * W

    # Free (copy-less) reshapes: no axis permutation, no padding.
    lg = logits.reshape(N, C, V).astype(jnp.float32)
    tg = targets.reshape(N, C, V).astype(jnp.float32)

    # Tile cap: 2 inputs x 2 pipeline buffers x padded-C sublanes x tile x 4B
    # kept under ~12 MiB so it fits every generation's default scoped VMEM.
    c_pad = ((C + 7) // 8) * 8
    tile_cap = (12 * 1024 * 1024) // (2 * 2 * c_pad * 4)
    tile = min(tile, tile_cap, pl.cdiv(V, 128) * 128)
    tile = max(128, (tile // 128) * 128)

    num_vt = pl.cdiv(V, tile)              # total voxel tiles
    num_vt_half = pl.cdiv(num_vt, 2)       # tiles per parallel shard
    grid = (2, N, num_vt_half)

    def in_map(p, n, j):
        # Clamp to a valid block; duplicate block is fully masked in-kernel.
        vt = jnp.minimum(p * num_vt_half + j, num_vt - 1)
        return (n, 0, vt)

    def out_map(p, n, j):
        return (p, 0, 0)

    kernel = functools.partial(
        _gdice_kernel, V=V, tile=tile, num_vt_half=num_vt_half)

    part = jax.ShapeDtypeStruct((2, C, 1), jnp.float32)

    out_t, out_l, out_tl = pl.pallas_call(
        kernel,
        out_shape=(part, part, part),
        grid_spec=pltpu.PrefetchScalarGridSpec(
            num_scalar_prefetch=0,
            grid=grid,
            in_specs=[
                pl.BlockSpec((1, C, tile), in_map),
                pl.BlockSpec((1, C, tile), in_map),
            ],
            out_specs=[
                pl.BlockSpec((1, C, 1), out_map),
                pl.BlockSpec((1, C, 1), out_map),
                pl.BlockSpec((1, C, 1), out_map),
            ],
            scratch_shapes=[
                pltpu.VMEM((C, 1), jnp.float32),
                pltpu.VMEM((C, 1), jnp.float32),
                pltpu.VMEM((C, 1), jnp.float32),
            ],
        ),
        compiler_params=pltpu.CompilerParams(
            dimension_semantics=("parallel", "arbitrary", "arbitrary"),
            vmem_limit_bytes=32 * 1024 * 1024,
        ),
    )(lg, tg)

    # Tiny epilogue: combine the two shards' partial sums and form the dice.
    st = jnp.sum(out_t[:, :, 0], axis=0)     # (C,)  sum(targets)
    sl = jnp.sum(out_l[:, :, 0], axis=0)     # (C,)  sum(logits)
    stl = jnp.sum(out_tl[:, :, 0], axis=0)   # (C,)  sum(targets * logits)

    smooth = jnp.float32(1e-10)
    w = 1.0 / (st * st + smooth)
    inter = w * stl
    union = w * (st + sl)
    return jnp.mean(2.0 * (inter + smooth) / (union + smooth))


def _reference(logits, targets):
    smooth = 1e-10
    w = jnp.sum(targets, axis=(0, 2, 3, 4))
    w = 1.0 / (w**2 + smooth)
    inter = w * jnp.sum(targets * logits, axis=(0, 2, 3, 4))
    union = w * jnp.sum(targets + logits, axis=(0, 2, 3, 4))
    return jnp.mean(2.0 * (inter + smooth) / (union + smooth))


if __name__ == "__main__":
    key = jax.random.PRNGKey(0)
    k1, k2 = jax.random.split(key)

    N, C, D, H, W = 2, 4, 8, 8, 8
    # logits: soft probabilities in [0, 1]; targets: one-hot binary masks.
    logits = jax.nn.softmax(
        jax.random.normal(k1, (N, C, D, H, W), dtype=jnp.float32), axis=1
    )
    labels = jax.random.randint(k2, (N, D, H, W), 0, C)
    targets = jax.nn.one_hot(labels, C, dtype=jnp.float32)          # (N,D,H,W,C)
    targets = jnp.transpose(targets, (0, 4, 1, 2, 3))               # (N,C,D,H,W)

    out = generalized_dice(logits, targets)
    out = jax.block_until_ready(out)

    ref = _reference(logits, targets)
    assert jnp.allclose(out, ref, rtol=1e-5, atol=1e-6), (out, ref)

    print("KERNEL_OK")
</pallas_src>

<mosaic_0001>
module attributes {stable_mosaic.version = 11 : i64} {
  func.func @_gdice_kernel(%arg0: i32, %arg1: i32, %arg2: i32, %arg3: memref<1x4x512xf32, #tpu.memory_space<vmem>>, %arg4: memref<1x4x512xf32, #tpu.memory_space<vmem>>, %arg5: memref<1x4x1xf32, #tpu.memory_space<vmem>>, %arg6: memref<1x4x1xf32, #tpu.memory_space<vmem>>, %arg7: memref<1x4x1xf32, #tpu.memory_space<vmem>>, %arg8: memref<4x1xf32, #tpu.memory_space<vmem>>, %arg9: memref<4x1xf32, #tpu.memory_space<vmem>>, %arg10: memref<4x1xf32, #tpu.memory_space<vmem>>) attributes {dimension_semantics = [#tpu.dimension_semantics<parallel>, #tpu.dimension_semantics<arbitrary>, #tpu.dimension_semantics<arbitrary>], iteration_bounds = array<i64: 2, 2, 1>, scalar_prefetch = 0 : i64, scratch_operands = 3 : i64, tpu.core_type = #tpu.core_type<tc>, window_params = [{transform_indices = @transform_0, window_bounds = array<i64: 1, 4, 512>}, {transform_indices = @transform_1, window_bounds = array<i64: 1, 4, 512>}, {transform_indices = @transform_2, window_bounds = array<i64: 1, 4, 1>}, {transform_indices = @transform_3, window_bounds = array<i64: 1, 4, 1>}, {transform_indices = @transform_4, window_bounds = array<i64: 1, 4, 1>}]} {
    %c0_i32 = arith.constant 0 : i32
    %0 = arith.cmpi eq, %arg1, %c0_i32 : i32
    %c0_i32_0 = arith.constant 0 : i32
    %1 = arith.cmpi eq, %arg2, %c0_i32_0 : i32
    %2 = arith.andi %0, %1 : i1
    %c1_i32 = arith.constant 1 : i32
    %3 = arith.cmpi eq, %arg1, %c1_i32 : i32
    %c0_i32_1 = arith.constant 0 : i32
    %4 = arith.cmpi eq, %arg2, %c0_i32_1 : i32
    %5 = arith.andi %3, %4 : i1
    %6 = arith.extui %2 : i1 to i32
    %c0_i32_2 = arith.constant 0 : i32
    %7 = arith.cmpi ne, %6, %c0_i32_2 : i32
    scf.if %7 {
      %cst = arith.constant 0.000000e+00 : f32
      %20 = vector.broadcast %cst : f32 to vector<4x1xf32>
      %c0 = arith.constant 0 : index
      %c0_9 = arith.constant 0 : index
      %21 = vector.load %arg8[%c0, %c0_9] : memref<4x1xf32, #tpu.memory_space<vmem>>, vector<4x1xf32>
      tpu.vector_store %arg8[%c0, %c0_9], %20 {strides = array<i32>} : memref<4x1xf32, #tpu.memory_space<vmem>>, vector<4x1xf32>,
      %cst_10 = arith.constant 0.000000e+00 : f32
      %22 = vector.broadcast %cst_10 : f32 to vector<4x1xf32>
      %c0_11 = arith.constant 0 : index
      %c0_12 = arith.constant 0 : index
      %23 = vector.load %arg9[%c0_11, %c0_12] : memref<4x1xf32, #tpu.memory_space<vmem>>, vector<4x1xf32>
      tpu.vector_store %arg9[%c0_11, %c0_12], %22 {strides = array<i32>} : memref<4x1xf32, #tpu.memory_space<vmem>>, vector<4x1xf32>,
      %cst_13 = arith.constant 0.000000e+00 : f32
      %24 = vector.broadcast %cst_13 : f32 to vector<4x1xf32>
      %c0_14 = arith.constant 0 : index
      %c0_15 = arith.constant 0 : index
      %25 = vector.load %arg10[%c0_14, %c0_15] : memref<4x1xf32, #tpu.memory_space<vmem>>, vector<4x1xf32>
      tpu.vector_store %arg10[%c0_14, %c0_15], %24 {strides = array<i32>} : memref<4x1xf32, #tpu.memory_space<vmem>>, vector<4x1xf32>,
      %cst_16 = arith.constant 0.000000e+00 : f32
      %26 = vector.broadcast %cst_16 : f32 to vector<1x4x1xf32>
      %c0_17 = arith.constant 0 : index
      %c0_18 = arith.constant 0 : index
      %c0_19 = arith.constant 0 : index
      %27 = vector.load %arg5[%c0_17, %c0_18, %c0_19] : memref<1x4x1xf32, #tpu.memory_space<vmem>>, vector<1x4x1xf32>
      tpu.vector_store %arg5[%c0_17, %c0_18, %c0_19], %26 {strides = array<i32>} : memref<1x4x1xf32, #tpu.memory_space<vmem>>, vector<1x4x1xf32>,
      %cst_20 = arith.constant 0.000000e+00 : f32
      %28 = vector.broadcast %cst_20 : f32 to vector<1x4x1xf32>
      %c0_21 = arith.constant 0 : index
      %c0_22 = arith.constant 0 : index
      %c0_23 = arith.constant 0 : index
      %29 = vector.load %arg6[%c0_21, %c0_22, %c0_23] : memref<1x4x1xf32, #tpu.memory_space<vmem>>, vector<1x4x1xf32>
      tpu.vector_store %arg6[%c0_21, %c0_22, %c0_23], %28 {strides = array<i32>} : memref<1x4x1xf32, #tpu.memory_space<vmem>>, vector<1x4x1xf32>,
      %cst_24 = arith.constant 0.000000e+00 : f32
      %30 = vector.broadcast %cst_24 : f32 to vector<1x4x1xf32>
      %c0_25 = arith.constant 0 : index
      %c0_26 = arith.constant 0 : index
      %c0_27 = arith.constant 0 : index
      %31 = vector.load %arg7[%c0_25, %c0_26, %c0_27] : memref<1x4x1xf32, #tpu.memory_space<vmem>>, vector<1x4x1xf32>
      tpu.vector_store %arg7[%c0_25, %c0_26, %c0_27], %30 {strides = array<i32>} : memref<1x4x1xf32, #tpu.memory_space<vmem>>, vector<1x4x1xf32>,
    } else {
    }
    %c1_i32_3 = arith.constant 1 : i32
    %8 = arith.muli %arg0, %c1_i32_3 : i32
    %9 = arith.addi %8, %arg2 : i32
    %c512_i32 = arith.constant 512 : i32
    %10 = arith.muli %9, %c512_i32 : i32
    %c512_i32_4 = arith.constant 512 : i32
    %11 = arith.addi %10, %c512_i32_4 : i32
    %c512_i32_5 = arith.constant 512 : i32
    %12 = arith.cmpi sgt, %11, %c512_i32_5 : i32
    %true = arith.constant true
    %13 = arith.xori %12, %true : i1
    %14 = arith.extui %13 : i1 to i32
    %c0_i32_6 = arith.constant 0 : i32
    %15 = arith.cmpi ne, %14, %c0_i32_6 : i32
    scf.if %15 {
      %c0 = arith.constant 0 : index
      %c0_9 = arith.constant 0 : index
      %c0_10 = arith.constant 0 : index
      %20 = vector.load %arg4[%c0, %c0_9, %c0_10] : memref<1x4x512xf32, #tpu.memory_space<vmem>>, vector<1x4x512xf32>
      %21 = vector.shape_cast %20 : vector<1x4x512xf32> to vector<4x512xf32>
      %c0_11 = arith.constant 0 : index
      %c0_12 = arith.constant 0 : index
      %c0_13 = arith.constant 0 : index
      %22 = vector.load %arg3[%c0_11, %c0_12, %c0_13] : memref<1x4x512xf32, #tpu.memory_space<vmem>>, vector<1x4x512xf32>
      %23 = vector.shape_cast %22 : vector<1x4x512xf32> to vector<4x512xf32>
      %c0_14 = arith.constant 0 : index
      %c0_15 = arith.constant 0 : index
      %24 = vector.load %arg8[%c0_14, %c0_15] : memref<4x1xf32, #tpu.memory_space<vmem>>, vector<4x1xf32>
      %cst = arith.constant dense<0.000000e+00> : vector<4xf32>
      %25 = vector.multi_reduction <add>, %21, %cst [1] : vector<4x512xf32> to vector<4xf32>
      %26 = vector.shape_cast %25 : vector<4xf32> to vector<4x1xf32>
      %27 = arith.addf %24, %26 : vector<4x1xf32>
      %c0_16 = arith.constant 0 : index
      %c0_17 = arith.constant 0 : index
      %28 = vector.load %arg8[%c0_16, %c0_17] : memref<4x1xf32, #tpu.memory_space<vmem>>, vector<4x1xf32>
      tpu.vector_store %arg8[%c0_16, %c0_17], %27 {strides = array<i32>} : memref<4x1xf32, #tpu.memory_space<vmem>>, vector<4x1xf32>,
      %c0_18 = arith.constant 0 : index
      %c0_19 = arith.constant 0 : index
      %29 = vector.load %arg9[%c0_18, %c0_19] : memref<4x1xf32, #tpu.memory_space<vmem>>, vector<4x1xf32>
      %cst_20 = arith.constant dense<0.000000e+00> : vector<4xf32>
      %30 = vector.multi_reduction <add>, %23, %cst_20 [1] : vector<4x512xf32> to vector<4xf32>
      %31 = vector.shape_cast %30 : vector<4xf32> to vector<4x1xf32>
      %32 = arith.addf %29, %31 : vector<4x1xf32>
      %c0_21 = arith.constant 0 : index
      %c0_22 = arith.constant 0 : index
      %33 = vector.load %arg9[%c0_21, %c0_22] : memref<4x1xf32, #tpu.memory_space<vmem>>, vector<4x1xf32>
      tpu.vector_store %arg9[%c0_21, %c0_22], %32 {strides = array<i32>} : memref<4x1xf32, #tpu.memory_space<vmem>>, vector<4x1xf32>,
      %c0_23 = arith.constant 0 : index
      %c0_24 = arith.constant 0 : index
      %34 = vector.load %arg10[%c0_23, %c0_24] : memref<4x1xf32, #tpu.memory_space<vmem>>, vector<4x1xf32>
      %35 = arith.mulf %21, %23 : vector<4x512xf32>
      %cst_25 = arith.constant dense<0.000000e+00> : vector<4xf32>
      %36 = vector.multi_reduction <add>, %35, %cst_25 [1] : vector<4x512xf32> to vector<4xf32>
      %37 = vector.shape_cast %36 : vector<4xf32> to vector<4x1xf32>
      %38 = arith.addf %34, %37 : vector<4x1xf32>
      %c0_26 = arith.constant 0 : index
      %c0_27 = arith.constant 0 : index
      %39 = vector.load %arg10[%c0_26, %c0_27] : memref<4x1xf32, #tpu.memory_space<vmem>>, vector<4x1xf32>
      tpu.vector_store %arg10[%c0_26, %c0_27], %38 {strides = array<i32>} : memref<4x1xf32, #tpu.memory_space<vmem>>, vector<4x1xf32>,
    } else {
    }
    %16 = arith.extui %12 : i1 to i32
    %c0_i32_7 = arith.constant 0 : i32
    %17 = arith.cmpi ne, %16, %c0_i32_7 : i32
    scf.if %17 {
      %20 = tpu.iota {dimensions = array<i32: 1>} : vector<4x512xi32>
      %21 = vector.broadcast %10 : i32 to vector<4x512xi32>
      %22 = arith.addi %21, %20 : vector<4x512xi32>
      %c512_i32_9 = arith.constant 512 : i32
      %23 = vector.broadcast %c512_i32_9 : i32 to vector<4x512xi32>
      %24 = arith.cmpi slt, %22, %23 : vector<4x512xi32>
      %c0 = arith.constant 0 : index
      %c0_10 = arith.constant 0 : index
      %c0_11 = arith.constant 0 : index
      %25 = vector.load %arg4[%c0, %c0_10, %c0_11] : memref<1x4x512xf32, #tpu.memory_space<vmem>>, vector<1x4x512xf32>
      %26 = vector.shape_cast %25 : vector<1x4x512xf32> to vector<4x512xf32>
      %cst = arith.constant 0.000000e+00 : f32
      %27 = vector.broadcast %cst : f32 to vector<4x512xf32>
      %28 = arith.select %24, %26, %27 : vector<4x512xi1>, vector<4x512xf32>
      %c0_12 = arith.constant 0 : index
      %c0_13 = arith.constant 0 : index
      %c0_14 = arith.constant 0 : index
      %29 = vector.load %arg3[%c0_12, %c0_13, %c0_14] : memref<1x4x512xf32, #tpu.memory_space<vmem>>, vector<1x4x512xf32>
      %30 = vector.shape_cast %29 : vector<1x4x512xf32> to vector<4x512xf32>
      %cst_15 = arith.constant 0.000000e+00 : f32
      %31 = vector.broadcast %cst_15 : f32 to vector<4x512xf32>
      %32 = arith.select %24, %30, %31 : vector<4x512xi1>, vector<4x512xf32>
      %c0_16 = arith.constant 0 : index
      %c0_17 = arith.constant 0 : index
      %33 = vector.load %arg8[%c0_16, %c0_17] : memref<4x1xf32, #tpu.memory_space<vmem>>, vector<4x1xf32>
      %cst_18 = arith.constant dense<0.000000e+00> : vector<4xf32>
      %34 = vector.multi_reduction <add>, %28, %cst_18 [1] : vector<4x512xf32> to vector<4xf32>
      %35 = vector.shape_cast %34 : vector<4xf32> to vector<4x1xf32>
      %36 = arith.addf %33, %35 : vector<4x1xf32>
      %c0_19 = arith.constant 0 : index
      %c0_20 = arith.constant 0 : index
      %37 = vector.load %arg8[%c0_19, %c0_20] : memref<4x1xf32, #tpu.memory_space<vmem>>, vector<4x1xf32>
      tpu.vector_store %arg8[%c0_19, %c0_20], %36 {strides = array<i32>} : memref<4x1xf32, #tpu.memory_space<vmem>>, vector<4x1xf32>,
      %c0_21 = arith.constant 0 : index
      %c0_22 = arith.constant 0 : index
      %38 = vector.load %arg9[%c0_21, %c0_22] : memref<4x1xf32, #tpu.memory_space<vmem>>, vector<4x1xf32>
      %cst_23 = arith.constant dense<0.000000e+00> : vector<4xf32>
      %39 = vector.multi_reduction <add>, %32, %cst_23 [1] : vector<4x512xf32> to vector<4xf32>
      %40 = vector.shape_cast %39 : vector<4xf32> to vector<4x1xf32>
      %41 = arith.addf %38, %40 : vector<4x1xf32>
      %c0_24 = arith.constant 0 : index
      %c0_25 = arith.constant 0 : index
      %42 = vector.load %arg9[%c0_24, %c0_25] : memref<4x1xf32, #tpu.memory_space<vmem>>, vector<4x1xf32>
      tpu.vector_store %arg9[%c0_24, %c0_25], %41 {strides = array<i32>} : memref<4x1xf32, #tpu.memory_space<vmem>>, vector<4x1xf32>,
      %c0_26 = arith.constant 0 : index
      %c0_27 = arith.constant 0 : index
      %43 = vector.load %arg10[%c0_26, %c0_27] : memref<4x1xf32, #tpu.memory_space<vmem>>, vector<4x1xf32>
      %44 = arith.mulf %28, %32 : vector<4x512xf32>
      %cst_28 = arith.constant dense<0.000000e+00> : vector<4xf32>
      %45 = vector.multi_reduction <add>, %44, %cst_28 [1] : vector<4x512xf32> to vector<4xf32>
      %46 = vector.shape_cast %45 : vector<4xf32> to vector<4x1xf32>
      %47 = arith.addf %43, %46 : vector<4x1xf32>
      %c0_29 = arith.constant 0 : index
      %c0_30 = arith.constant 0 : index
      %48 = vector.load %arg10[%c0_29, %c0_30] : memref<4x1xf32, #tpu.memory_space<vmem>>, vector<4x1xf32>
      tpu.vector_store %arg10[%c0_29, %c0_30], %47 {strides = array<i32>} : memref<4x1xf32, #tpu.memory_space<vmem>>, vector<4x1xf32>,
    } else {
    }
    %18 = arith.extui %5 : i1 to i32
    %c0_i32_8 = arith.constant 0 : i32
    %19 = arith.cmpi ne, %18, %c0_i32_8 : i32
    scf.if %19 {
      %c0 = arith.constant 0 : index
      %c0_9 = arith.constant 0 : index
      %20 = vector.load %arg8[%c0, %c0_9] : memref<4x1xf32, #tpu.memory_space<vmem>>, vector<4x1xf32>
      %c0_10 = arith.constant 0 : index
      %c0_11 = arith.constant 0 : index
      %c0_12 = arith.constant 0 : index
      %21 = vector.load %arg5[%c0_10, %c0_11, %c0_12] : memref<1x4x1xf32, #tpu.memory_space<vmem>>, vector<1x4x1xf32>
      %22 = vector.shape_cast %21 : vector<1x4x1xf32> to vector<4x1xf32>
      %23 = vector.shape_cast %20 : vector<4x1xf32> to vector<1x4x1xf32>
      tpu.vector_store %arg5[%c0_10, %c0_11, %c0_12], %23 {strides = array<i32>} : memref<1x4x1xf32, #tpu.memory_space<vmem>>, vector<1x4x1xf32>,
      %c0_13 = arith.constant 0 : index
      %c0_14 = arith.constant 0 : index
      %24 = vector.load %arg9[%c0_13, %c0_14] : memref<4x1xf32, #tpu.memory_space<vmem>>, vector<4x1xf32>
      %c0_15 = arith.constant 0 : index
      %c0_16 = arith.constant 0 : index
      %c0_17 = arith.constant 0 : index
      %25 = vector.load %arg6[%c0_15, %c0_16, %c0_17] : memref<1x4x1xf32, #tpu.memory_space<vmem>>, vector<1x4x1xf32>
      %26 = vector.shape_cast %25 : vector<1x4x1xf32> to vector<4x1xf32>
      %27 = vector.shape_cast %24 : vector<4x1xf32> to vector<1x4x1xf32>
      tpu.vector_store %arg6[%c0_15, %c0_16, %c0_17], %27 {strides = array<i32>} : memref<1x4x1xf32, #tpu.memory_space<vmem>>, vector<1x4x1xf32>,
      %c0_18 = arith.constant 0 : index
      %c0_19 = arith.constant 0 : index
      %28 = vector.load %arg10[%c0_18, %c0_19] : memref<4x1xf32, #tpu.memory_space<vmem>>, vector<4x1xf32>
      %c0_20 = arith.constant 0 : index
      %c0_21 = arith.constant 0 : index
      %c0_22 = arith.constant 0 : index
      %29 = vector.load %arg7[%c0_20, %c0_21, %c0_22] : memref<1x4x1xf32, #tpu.memory_space<vmem>>, vector<1x4x1xf32>
      %30 = vector.shape_cast %29 : vector<1x4x1xf32> to vector<4x1xf32>
      %31 = vector.shape_cast %28 : vector<4x1xf32> to vector<1x4x1xf32>
      tpu.vector_store %arg7[%c0_20, %c0_21, %c0_22], %31 {strides = array<i32>} : memref<1x4x1xf32, #tpu.memory_space<vmem>>, vector<1x4x1xf32>,
    } else {
    }
    return
  }
  func.func @transform_0(%arg0: i32, %arg1: i32, %arg2: i32) -> (i32, i32, i32) {
    %c1_i32 = arith.constant 1 : i32
    %0 = arith.muli %arg0, %c1_i32 : i32
    %1 = arith.addi %0, %arg2 : i32
    %c0_i32 = arith.constant 0 : i32
    %2 = arith.minsi %1, %c0_i32 : i32
    %c0_i32_0 = arith.constant 0 : i32
    %c0_i32_1 = arith.constant 0 : i32
    return %arg1, %c0_i32_0, %2 : i32, i32, i32
  }
  func.func @transform_1(%arg0: i32, %arg1: i32, %arg2: i32) -> (i32, i32, i32) {
    %c1_i32 = arith.constant 1 : i32
    %0 = arith.muli %arg0, %c1_i32 : i32
    %1 = arith.addi %0, %arg2 : i32
    %c0_i32 = arith.constant 0 : i32
    %2 = arith.minsi %1, %c0_i32 : i32
    %c0_i32_0 = arith.constant 0 : i32
    %c0_i32_1 = arith.constant 0 : i32
    return %arg1, %c0_i32_0, %2 : i32, i32, i32
  }
  func.func @transform_2(%arg0: i32, %arg1: i32, %arg2: i32) -> (i32, i32, i32) {
    %c0_i32 = arith.constant 0 : i32
    %c0_i32_0 = arith.constant 0 : i32
    %c0_i32_1 = arith.constant 0 : i32
    return %arg0, %c0_i32, %c0_i32_0 : i32, i32, i32
  }
  func.func @transform_3(%arg0: i32, %arg1: i32, %arg2: i32) -> (i32, i32, i32) {
    %c0_i32 = arith.constant 0 : i32
    %c0_i32_0 = arith.constant 0 : i32
    %c0_i32_1 = arith.constant 0 : i32
    return %arg0, %c0_i32, %c0_i32_0 : i32, i32, i32
  }
  func.func @transform_4(%arg0: i32, %arg1: i32, %arg2: i32) -> (i32, i32, i32) {
    %c0_i32 = arith.constant 0 : i32
    %c0_i32_0 = arith.constant 0 : i32
    %c0_i32_1 = arith.constant 0 : i32
    return %arg0, %c0_i32, %c0_i32_0 : i32, i32, i32
  }
}

</mosaic_0001>

<bundles_post_ra>
// kernel: tpu_custom_call.1
= control target key start
LH: loop header
LB: loop body
LE: loop exit
PB: predicated region body
PF: predicated region fallthrough
CT: control target
= control target key end

     0   :  { %10 = vsyncpa [#allocation6], 0  ;;  %s1182_s0 = inlined_call_operand.hbm [shape: f32[2,4,512], index: 0, kind: input, shape index: {}]   ;;  %s1183_s1 = inlined_call_operand.hbm [shape: f32[2,4,512], index: 1, kind: input, shape index: {}]   ;;  %s1184_s2 = inlined_call_operand.vmem [shape: f32[2,4,1], index: 2, kind: output, shape index: {0}]   ;;  %s1185_s3 = inlined_call_operand.vmem [shape: f32[2,4,1], index: 3, kind: output, shape index: {1}]   ;;  %s1186_s4 = inlined_call_operand.vmem [shape: f32[2,4,1], index: 4, kind: output, shape index: {2}]  }
   0x1   :  { %12 = vsyncpa [#allocation6 + $0x1], 0 }
   0x2   :  { %13 = vsyncpa [#allocation8], 0 }
   0x3   :  { %15 = vsyncpa [#allocation8 + $0x1], 0  ;;  %s943_s15 = smov 0   ;;  %s945_s16 = smov 0  }
   0x4   :  { %s947_s17 = smov 0   ;;  %s949_s18 = smov 0  }
   0x5   :  { %s951_s19 = smov 0   ;;  %s953_s20 = smov 0  }
   0x6   :  { %s955_s21 = smov 0   ;;  %s957_s22 = smov 0  }
   0x7 LB: > { %s674_s23 = sadd.s32 4294967295, %s913_s22   ;;  %s36_s24 = sadd.s32 1, %s905_s20  ;;  %s913_s22 = sphi %s957_s22, %s21_s22   ;;  %s909_s21 = sphi %s955_s21, %s1198_s21   ;;  %s905_s20 = sphi %s953_s20, %s1197_s20   ;;  %s901_s19 = sphi %s951_s19, %s1196_s19   ;;  %s897_s18 = sphi %s949_s18, %s1195_s18   ;;  %s893_s17 = sphi %s947_s17, %s1194_s17   ;;  %s889_s16 = sphi %s945_s16, %s1193_s16   ;;  %s885_s15 = sphi %s943_s15, %s1192_s15  }
   0x8   : > { %p38_p0 = scmp.ge.s32.totalorder %s36_s24, 2  ;;  %s40_s25 = sadd.s32 1, %s909_s21 }
   0x9   : > { %s55_s26 = sadd.s32 1, %s893_s17  ;;  %p62_p2 = scmp.ne.s32.totalorder %s893_s17, %s889_s16 }
   0xa   : > { %s1200_s24 = smov (%p38_p0, %s36_s24), 0  ;;  %s1202_s25 = smov (!%p38_p0, %s40_s25), %s909_s21 }
   0xb   : > { %p42_p1 = scmp.ge.s32.totalorder %s1202_s25, 2  ;;  %s50_s27 = ssub.s32 %s905_s20, %s1200_s24 }
   0xc   : > { %p63_p3 = scmp.eq.s32.totalorder %s913_s22, 0  ;;  %p68_p5 = scmp.ne.s32.totalorder %s889_s16, %s885_s15 }
   0xd   : > { %s1204_s25 = smov (%p42_p1, %s1202_s25), 0  ;;  %p69_p6 = scmp.eq.s32.totalorder %s674_s23, 0 }
   0xe   : > { %p995_p4 = por %p63_p3, %p62_p2  ;;  %p712_p7 = scmp.lt.s32.totalorder %s913_s22, 4 }
   0xf   : > { %p1001_p8 = por %p69_p6, %p68_p5  ;;  %s1006_s30 = sand.u32 1, %s893_s17  }
  0x10   : > { %s678_s5 = sshll.u32 %s1006_s30, 4  ;;  %p53_p9 = scmp.eq.s32.totalorder %s50_s27, 0 }
  0x11   : > { %s208_s7 = scalar_lea.vmem [#allocation5], %s678_s5  ;;  %s882_s9 = sshll.u32 %s905_s20, 8 }
  0x12   : > { %s1010_s6 = scalar_select %p53_p9, %s893_s17, %s55_s26  }
  0x13   : > { %s221_s8 = sshll.u32 %s208_s7, 4  ;;  %s219_s12 = scalar_lea.hbm %s1182_s0, %s882_s9  ;;  %s1015_s8 = int_to_ptr.vmem [resolvable:$true] %s221_s8 }
  0x14   : > { %p1024_p10 = pnand %p712_p7, %p995_p4  ;;  %p250_p12 = scmp.lt.s32.totalorder %s913_s22, 5 }
  0x15   : > { %s205_s14 = scalar_lea.sflag [#allocation6], %s1006_s30  ;;  %s786_s15 = scalar_lea.hbm %s219_s12, 256 }
  0x16   : > { %p787_p13 = scmp.ne.s32.totalorder %s219_s12, %s786_s15  ;;  %p788_p0 = pneg %p1024_p10 }
  0x17   : > { %s791_s27 = scalar_lea.hbm %s1182_s0, 512 }
  0x18   : > { %p789_p1 = pnand %p788_p0, %p787_p13  ;;  %p793_p3 = scmp.lt.s32.totalorder %s791_s27, %s786_s15 }
  0x1a   : > { %p790_p2 = pneg %p789_p1 }
  0x1c   : > { %p795_p4 = pnand %p793_p3, %p790_p2 }
  0x1e   : > { %798 = shalt.err (!%p795_p4)
}
  0x1f   : > { %s799_s28 = scalar_lea.vmem %s1015_s8, 256  ;;  %s915_s7 = smov [#allocation5]  }
  0x20   : > { %p800_p5 = scmp.ne.s32.totalorder %s1015_s8, %s799_s28  ;;  %s804_s10 = sshll.u32 %s915_s7, 4  ;;  %s805_s10 = int_to_ptr.vmem [resolvable:$false] %s804_s10 }
  0x21   : > { %s806_s11 = scalar_lea.vmem %s805_s10, 512  ;;  %p807_p9 = scmp.lt.s32.totalorder %s1015_s8, %s805_s10 }
  0x22   : > { %p802_p6 = pnand %p800_p5, %p788_p0  ;;  %p808_p13 = scmp.lt.s32.totalorder %s806_s11, %s799_s28 }
  0x24   : > { %p803_p7 = pneg %p802_p6  ;;  %p809_p1 = por %p808_p13, %p807_p9 }
  0x26   : > { %p810_p11 = pnand %p809_p1, %p803_p7 }
  0x28   : > { %813 = shalt.err (!%p810_p11)
}
  0x29   : > { %708 = dma.hbm_to_vmem [thread:$0]  (!%p1024_p10), %s219_s12, 256, %s1015_s8, %s205_s14  }
  0x2a   : > { %p1190_p2 = scmp.ge.s32.totalorder %s913_s22, 1  ;;  %s243_s27 = scalar_lea.hbm %s1183_s1, %s882_s9 }
  0x2b   : > { %s232_s28 = scalar_lea.vmem [#allocation7], %s678_s5  ;;  %s229_s10 = scalar_lea.sflag [#allocation8], %s1006_s30 }
  0x2c   : > { %p1052_p3 = pnand %p1190_p2, %p250_p12  ;;  %s245_s7 = sshll.u32 %s232_s28, 4  ;;  %s246_s7 = int_to_ptr.vmem [resolvable:$true] %s245_s7 }
  0x2d   : > { %s814_s11 = scalar_lea.hbm %s243_s27, 256  ;;  %s819_s14 = scalar_lea.hbm %s1183_s1, 512 }
  0x2e   : > { %p815_p11 = scmp.ne.s32.totalorder %s243_s27, %s814_s11  ;;  %p821_p12 = scmp.lt.s32.totalorder %s819_s14, %s814_s11 }
  0x30   : > { %p817_p4 = pnand %p815_p11, %p788_p0 }
  0x32   : > { %p818_p5 = pneg %p817_p4 }
  0x34   : > { %p823_p6 = pnand %p821_p12, %p818_p5 }
  0x36   : > { %826 = shalt.err (!%p823_p6)
}
  0x37   : > { %s827_s23 = scalar_lea.vmem %s246_s7, 256  ;;  %s916_s30 = smov [#allocation7]  }
  0x38   : > { %p828_p7 = scmp.ne.s32.totalorder %s246_s7, %s827_s23  ;;  %s832_s5 = sshll.u32 %s916_s30, 4  ;;  %s833_s5 = int_to_ptr.vmem [resolvable:$false] %s832_s5 }
  0x39   : > { %s834_s9 = scalar_lea.vmem %s833_s5, 512  ;;  %p835_p1 = scmp.lt.s32.totalorder %s246_s7, %s833_s5 }
  0x3a   : > { %p830_p9 = pnand %p828_p7, %p788_p0  ;;  %p836_p2 = scmp.lt.s32.totalorder %s834_s9, %s827_s23 }
  0x3c   : > { %p831_p13 = pneg %p830_p9  ;;  %p837_p11 = por %p836_p2, %p835_p1 }
  0x3e   : > { %p838_p4 = pnand %p837_p11, %p831_p13 }
  0x40   : > { %841 = shalt.err (!%p838_p4)
}
  0x41   : > { %711 = dma.hbm_to_vmem [thread:$0]  (!%p1024_p10), %s243_s27, 256, %s246_s7, %s229_s10  }
  0x42   : > { %254 = sbr.rel (%p1052_p3) target bundleno = 423 (0x1a7), region = 28  ;;  %s256_s26 = sand.u32 (!%p1052_p3), 1, %s889_s16  }
  0x43   : > { %s687_s28 = sshll.u32 (!%p1052_p3), %s256_s26, 4  ;;  %s257_s11 = scalar_lea.sflag (!%p1052_p3), [#allocation6], %s256_s26 }
  0x44   : > { %s1078_s8 = scalar_lea.vmem (!%p1052_p3), [#allocation5], %s687_s28 }
  0x47   : > { %875 = dma.done.wait (%p1001_p8), %s257_s11, 256  }
  0x48   : > { %877 = vsyncadd (%p1001_p8), %s257_s11, 4294967040  ;;  %s266_s12 = scalar_lea.sflag [#allocation8], %s256_s26  ;;  %s1084_s14 = scalar_lea.vmem [#allocation7], %s687_s28 }
  0x49   : > { %879 = dma.done.wait (%p1001_p8), %s266_s12, 256  }
  0x4a   : > { %881 = vsyncadd (%p1001_p8), %s266_s12, 4294967040  ;;  %p314_p10 = scmp.lt.s32.totalorder %s901_s19, 1  ;;  %p326_p0 = scmp.eq.s32.totalorder %s897_s18, 0 }
  0x4b   : > { %p330_p3 = scmp.eq.s32.totalorder %s897_s18, 1  ;;  %vm335_vm0 = vcmask (%p326_p0), 3072   ;;  %v917_v0 = vmov (%p326_p0), 0.0  }
  0x4c   : > { %s315_s13 = scalar_select %p314_p10, %s901_s19, 1  ;;  %336 = vst.msk [vmem:[#allocation2] sm:$0xf] (%p326_p0), %vm335_vm0, %v917_v0  ;;  %337 = vst.msk [vmem:[#allocation3] sm:$0xf] (%p326_p0), %vm335_vm0, %v917_v0 }
  0x4d   : > { %334 = sbr.rel (!%p326_p0) target bundleno = 82 (0x52), region = 40  ;;  %338 = vst.msk [vmem:[#allocation4] sm:$0xf] (%p326_p0), %vm335_vm0, %v917_v0 }
  0x4e   : > { %s689_s15 = sshll.u32 %s315_s13, 2 }
  0x4f   : > { %s1097_s10 = scalar_lea.vmem %s1184_s2, %s689_s15  ;;  %s1102_s5 = scalar_lea.vmem %s1185_s3, %s689_s15 }
  0x50   : > { %s1107_s26 = scalar_lea.vmem %s1186_s4, %s689_s15  ;;  %339 = vst.msk [vmem:[%s1097_s10] sm:$0xf] (%p326_p0), %vm335_vm0, %v917_v0  ;;  %340 = vst.msk [vmem:[%s1102_s5] sm:$0xf] (%p326_p0), %vm335_vm0, %v917_v0 }
  0x51   : > { %341 = vst.msk [vmem:[%s1107_s26] sm:$0xf] (%p326_p0), %vm335_vm0, %v917_v0 }
  0x52 PF: > { %s694_s28 = sshll.u32 %s901_s19, 9 }
  0x53   : > { %s1115_s11 = sadd.s32 512, %s694_s28 }
  0x54   : > { %p695_p8 = scmp.gt.s32.totalorder %s1115_s11, 512 }
  0x56   : > { %349 = sbr.rel (%p695_p8) target bundleno = 246 (0xf6), region = 44 }
  0x5b   : > { %v350_v1 = vld [vmem:[%s1084_s14] sm:$0xff]  ;;  %v351_v2 = vld [vmem:[%s1084_s14 + $0x8] sm:$0xff]  ;;  %vm361_vm1 = vcmask 1043456   ;;  %vm372_vm2 = vcmask 3072  }
  0x5c   : > { %v352_v3 = vld [vmem:[%s1078_s8] sm:$0xff]  ;;  %v357_v4 = vcombine.high %v350_v1, %v350_v1  ;;  %v358_v5 = vcombine.high %v351_v2, %v351_v2  ;;  %v362_v6 = vsel %vm361_vm1, %v350_v1, 0.0  ;;  %v353_v7 = vld [vmem:[%s1078_s8 + $0x8] sm:$0xff]  ;;  %v365_v12 = vsel %vm361_vm1, %v351_v2, 0.0 }
  0x5d   : > { %v393_v8 = vmul.f32 %v352_v3, %v350_v1  ;;  %v394_v9 = vmul.f32 %v353_v7, %v351_v2  ;;  %v377_v10 = vcombine.high %v352_v3, %v352_v3  ;;  %v378_v13 = vcombine.high %v353_v7, %v353_v7  ;;  %v354_v34 = vld [vmem:[#allocation2] sm:$0xf]  ;;  %v392_v37 = vld [vmem:[#allocation4] sm:$0xf]  ;;  %v374_v38 = vld [vmem:[#allocation3] sm:$0xf] }
  0x5e   : > { %v363_v11 = vsel %vm361_vm1, %v357_v4, 0.0  ;;  %v381_v14 = vsel %vm361_vm1, %v352_v3, 0.0  ;;  %v367_v19 = vsel %vm361_vm1, %v358_v5, 0.0  ;;  %v384_v21 = vsel %vm361_vm1, %v353_v7, 0.0 }
  0x5f   : > { %v364_v15 = vadd.f32 %v363_v11, %v362_v6  ;;  %v397_v16 = vcombine.high %v393_v8, %v393_v8  ;;  %v398_v17 = vcombine.high %v394_v9, %v394_v9  ;;  %v401_v18 = vsel %vm361_vm1, %v393_v8, 0.0 }
  0x60   : > { %v382_v20 = vsel %vm361_vm1, %v377_v10, 0.0  ;;  %v404_v24 = vsel %vm361_vm1, %v394_v9, 0.0  ;;  %v386_v27 = vsel %vm361_vm1, %v378_v13, 0.0 }
  0x61   : > { %v366_v22 = vadd.f32 %v365_v12, %v364_v15  ;;  %v402_v23 = vsel %vm361_vm1, %v397_v16, 0.0  ;;  %v383_v25 = vadd.f32 %v382_v20, %v381_v14  ;;  %v406_v29 = vsel %vm361_vm1, %v398_v17, 0.0 }
  0x62   : > { %v403_v26 = vadd.f32 %v402_v23, %v401_v18 }
  0x63   : > { %v368_v28 = vadd.f32 %v367_v19, %v366_v22  ;;  %v385_v30 = vadd.f32 %v384_v21, %v383_v25 }
  0x64   : > { %v405_v31 = vadd.f32 %v404_v24, %v403_v26 }
  0x65   : > { %369 = vadd.xlane.f32.xlu0 %v368_v28  ;;  %v387_v32 = vadd.f32 %v386_v27, %v385_v30 }
  0x66   : > { %v407_v33 = vadd.f32 %v406_v29, %v405_v31 }
  0x68   : > { %408 = vadd.xlane.f32.xlu1 %v407_v33 }
  0x69   : > { %388 = vadd.xlane.f32.xlu0 %v387_v32 }
  0xee   : > { %v370_v35 = vpop.xlane.xlu0 %369 }
  0xef   : > { %v371_v36 = vadd.f32 %v370_v35, %v354_v34 }
  0xf1   : > { %373 = vst.msk [vmem:[#allocation2] sm:$0xf] %vm372_vm2, %v371_v36  ;;  %v409_v39 = vpop.xlane.xlu1 %408 }
  0xf2   : > { %v410_v40 = vadd.f32 %v409_v39, %v392_v37  ;;  %v389_v41 = vpop.xlane.xlu0 %388 }
  0xf3   : > { %v390_v42 = vadd.f32 %v389_v41, %v374_v38 }
  0xf4   : > { %411 = vst.msk [vmem:[#allocation4] sm:$0xf] %vm372_vm2, %v410_v40 }
  0xf5   : > { %391 = vst.msk [vmem:[#allocation3] sm:$0xf] %vm372_vm2, %v390_v42 }
  0xf6 PF: > { %p696_p5 = scmp.le.s32.totalorder %s1115_s11, 512 }
  0xf8   : > { %414 = sbr.rel (%p696_p5) target bundleno = 415 (0x19f), region = 48 }
  0xfd   : > { %v415_v43 = vlaneseq  ;;  %v420_v44 = vstv %s694_s28  ;;  %v429_v46 = vld [vmem:[%s1084_s14] sm:$0xff]  ;;  %v430_v47 = vld [vmem:[%s1084_s14 + $0x8] sm:$0xff]  ;;  %vm454_vm3 = vcmask 1043456   ;;  %vm465_vm8 = vcmask 3072  }
  0xfe   : > { %v441_v48 = vld [vmem:[%s1078_s8] sm:$0xff]  ;;  %v442_v53 = vld [vmem:[%s1078_s8 + $0x8] sm:$0xff]  ;;  %v433_v54 = vcombine.high %v429_v46, %v429_v46  ;;  %v434_v55 = vcombine.high %v430_v47, %v430_v47 }
  0xff   : > { %v416_v45 = vand.u32 127, %v415_v43  ;;  %v445_v56 = vcombine.high %v441_v48, %v441_v48  ;;  %v446_v61 = vcombine.high %v442_v53, %v442_v53  ;;  %v453_v30 = vld [vmem:[#allocation2] sm:$0xf]  ;;  %v479_v33 = vld [vmem:[#allocation4] sm:$0xf] }
 0x100   : > { %v467_v34 = vld [vmem:[#allocation3] sm:$0xf] }
 0x101   : > { %v417_v49 = vadd.s32 128, %v416_v45  ;;  %v418_v50 = vadd.s32 256, %v416_v45  ;;  %v419_v51 = vadd.s32 384, %v416_v45  ;;  %v421_v52 = vadd.s32 %v420_v44, %v416_v45 }
 0x103   : > { %v422_v57 = vadd.s32 %v420_v44, %v417_v49  ;;  %v423_v58 = vadd.s32 %v420_v44, %v418_v50  ;;  %v424_v59 = vadd.s32 %v420_v44, %v419_v51  ;;  %vm425_vm4 = vcmp.lt.s32.totalorder %v421_v52, 512 }
 0x104   : > { %v437_v60 = vsel %vm425_vm4, %v429_v46, 0.0  ;;  %v449_v62 = vsel %vm425_vm4, %v441_v48, 0.0 }
 0x105   : > { %vm426_vm5 = vcmp.lt.s32.totalorder %v422_v57, 512  ;;  %vm427_vm6 = vcmp.lt.s32.totalorder %v423_v58, 512  ;;  %vm428_vm7 = vcmp.lt.s32.totalorder %v424_v59, 512  ;;  %v455_v63 = vsel %vm454_vm3, %v437_v60, 0.0 }
 0x106   : > { %v438_v0 = vsel %vm426_vm5, %v433_v54, 0.0  ;;  %v439_v1 = vsel %vm427_vm6, %v430_v47, 0.0  ;;  %v440_v2 = vsel %vm428_vm7, %v434_v55, 0.0  ;;  %v450_v3 = vsel %vm426_vm5, %v445_v56, 0.0 }
 0x107   : > { %v456_v4 = vsel %vm454_vm3, %v438_v0, 0.0  ;;  %v458_v5 = vsel %vm454_vm3, %v439_v1, 0.0  ;;  %v460_v6 = vsel %vm454_vm3, %v440_v2, 0.0  ;;  %v451_v7 = vsel %vm427_vm6, %v442_v53, 0.0 }
 0x108   : > { %v457_v8 = vadd.f32 %v456_v4, %v455_v63  ;;  %v452_v9 = vsel %vm428_vm7, %v446_v61, 0.0  ;;  %v480_v10 = vmul.f32 %v449_v62, %v437_v60  ;;  %v481_v11 = vmul.f32 %v450_v3, %v438_v0 }
 0x109   : > { %v482_v12 = vmul.f32 %v451_v7, %v439_v1  ;;  %v483_v13 = vmul.f32 %v452_v9, %v440_v2  ;;  %v468_v14 = vsel %vm454_vm3, %v449_v62, 0.0  ;;  %v469_v15 = vsel %vm454_vm3, %v450_v3, 0.0 }
 0x10a   : > { %v459_v16 = vadd.f32 %v458_v5, %v457_v8  ;;  %v484_v17 = vsel %vm454_vm3, %v480_v10, 0.0  ;;  %v485_v18 = vsel %vm454_vm3, %v481_v11, 0.0  ;;  %v470_v19 = vadd.f32 %v469_v15, %v468_v14 }
 0x10b   : > { %v486_v20 = vadd.f32 %v485_v18, %v484_v17  ;;  %v487_v21 = vsel %vm454_vm3, %v482_v12, 0.0  ;;  %v471_v22 = vsel %vm454_vm3, %v451_v7, 0.0  ;;  %v489_v24 = vsel %vm454_vm3, %v483_v13, 0.0 }
 0x10c   : > { %v461_v23 = vadd.f32 %v460_v6, %v459_v16  ;;  %v472_v25 = vadd.f32 %v471_v22, %v470_v19  ;;  %v473_v26 = vsel %vm454_vm3, %v452_v9, 0.0 }
 0x10d   : > { %v488_v27 = vadd.f32 %v487_v21, %v486_v20 }
 0x10e   : > { %462 = vadd.xlane.f32.xlu0 %v461_v23  ;;  %v474_v28 = vadd.f32 %v473_v26, %v472_v25 }
 0x10f   : > { %v490_v29 = vadd.f32 %v489_v24, %v488_v27 }
 0x111   : > { %491 = vadd.xlane.f32.xlu1 %v490_v29 }
 0x112   : > { %475 = vadd.xlane.f32.xlu0 %v474_v28 }
 0x197   : > { %v463_v31 = vpop.xlane.xlu0 %462 }
 0x198   : > { %v464_v32 = vadd.f32 %v463_v31, %v453_v30 }
 0x19a   : > { %466 = vst.msk [vmem:[#allocation2] sm:$0xf] %vm465_vm8, %v464_v32  ;;  %v492_v35 = vpop.xlane.xlu1 %491 }
 0x19b   : > { %v493_v36 = vadd.f32 %v492_v35, %v479_v33  ;;  %v476_v37 = vpop.xlane.xlu0 %475 }
 0x19c   : > { %v477_v38 = vadd.f32 %v476_v37, %v467_v34 }
 0x19d   : > { %494 = vst.msk [vmem:[#allocation4] sm:$0xf] %vm465_vm8, %v493_v36 }
 0x19e   : > { %478 = vst.msk [vmem:[#allocation3] sm:$0xf] %vm465_vm8, %v477_v38 }
 0x19f PF: > { %496 = sbr.rel (!%p330_p3) target bundleno = 423 (0x1a7), region = 52  ;;  %vm498_vm9 = vcmask (%p330_p3), 3072  }
 0x1a1   : > { %v497_v39 = vld [vmem:[#allocation2] sm:$0xf] (%p330_p3) }
 0x1a2   : > { %499 = vst.msk [vmem:[%s1097_s10] sm:$0xf] (%p330_p3), %vm498_vm9, %v497_v39 }
 0x1a4   : > { %v502_v41 = vld [vmem:[#allocation4] sm:$0xf] }
 0x1a5   : > { %v500_v40 = vld [vmem:[#allocation3] sm:$0xf]  ;;  %503 = vst.msk [vmem:[%s1107_s26] sm:$0xf] %vm498_vm9, %v502_v41 }
 0x1a6   : > { %501 = vst.msk [vmem:[%s1102_s5] sm:$0xf] %vm498_vm9, %v500_v40 }
 0x1a7 PF: > { %s21_s22 = sadd.s32 1, %s913_s22   ;;  %s1192_s15 = smov %s889_s16 }
 0x1a8   : > { %p18_p12 = scmp.ge.s32.totalorder %s21_s22, 6   ;;  %s1193_s16 = smov %s893_s17 }
 0x1a9   : > { %s1194_s17 = smov %s1010_s6  ;;  %s1195_s18 = smov %s905_s20 }
 0x1aa   : > { %s1196_s19 = smov %s909_s21  ;;  %s1197_s20 = smov %s1200_s24 }
 0x1ab   : > { %s1198_s21 = smov %s1204_s25  ;;  %20 = sbr.rel (!%p18_p12) target bundleno = 7 (0x7), region = 121 }
 0x1b0   :  { %551 = vsyncpa [#allocation6], 1 }
 0x1b1   :  { %553 = vsyncpa [#allocation6 + $0x1], 1 }
 0x1b2   :  { %554 = vsyncpa [#allocation8], 1 }
 0x1b3   :  { %556 = vsyncpa [#allocation8 + $0x1], 1 }

</bundles_post_ra>
